<compile_context>
chip_gen: v6e
topology: v6e:2x2x1
jax: 0.10.0
libtpu: 0.0.40
codegen_flags: <defaults>
</compile_context>

<pallas_src>
import functools
import math

import jax
import jax.numpy as jnp
from jax.experimental import pallas as pl
from jax.experimental.pallas import tpu as pltpu


def _label_relaxation_kernel(labels_ref, pred_ref, out_ref, *,
                             alpha, log_alpha, log_one_minus_alpha,
                             n_rows, tile_n):
    i = pl.program_id(0)

    logits = pred_ref[...].astype(jnp.float32)                  # (TILE_N, C)
    labels = labels_ref[...]                                     # (TILE_N, 1) int32

    # Zero padded rows of a partial last tile before any transcendental so
    # stale VMEM contents cannot produce inf/nan.
    row = jax.lax.broadcasted_iota(jnp.int32, (tile_n, 1), 0) + i * tile_n
    row_valid = row < n_rows                                      # (TILE_N, 1)
    logits = jnp.where(row_valid, logits, 0.0)

    cls = jax.lax.broadcasted_iota(jnp.int32, logits.shape, 1)    # (TILE_N, C)
    is_true = cls == labels                                       # one-hot mask

    # log-softmax pieces; exp(shifted) is the only full-tile transcendental.
    m = jnp.max(logits, axis=-1, keepdims=True)                   # (TILE_N, 1)
    shifted = logits - m                                          # (TILE_N, C)
    e = jnp.exp(shifted)                                          # (TILE_N, C)
    sum_e = jnp.sum(e, axis=-1, keepdims=True)                    # (TILE_N, 1)
    true_shifted = jnp.sum(jnp.where(is_true, shifted, 0.0),
                           axis=-1, keepdims=True)                # (TILE_N, 1)

    log_sum_e = jnp.log(sum_e)                                    # per-row
    log_p_true = true_shifted - log_sum_e                         # log softmax(true)
    e_true = jnp.exp(true_shifted)                                # per-row
    off_e = sum_e - e_true                                        # sum of off-class exp
    log_one_minus_p = jnp.log(off_e) - log_sum_e                  # log(1 - p_true)

    # Closed form of sum_j KL(target_credal_j || softmax_j).
    divergence = (alpha * (log_alpha - log_one_minus_p)
                  + (1.0 - alpha) * (log_one_minus_alpha - log_p_true))

    # p_true > 1 - alpha  <=>  off_e < alpha * sum_e   (no exposed cancellation;
    # jnp.where select does not propagate inf/nan from the unselected branch).
    result = jnp.where(off_e < alpha * sum_e, 0.0, divergence)    # (TILE_N, 1)
    result = jnp.where(row_valid, result, 0.0)

    out_ref[0, 0] = jnp.sum(result)


# Stay well under v7x's 64 MiB / TensorCore physical VMEM (v5e/v6e have 128 MiB,
# where measured gains past ~8 MiB pred tiles are marginal anyway).
_VMEM_LIMIT_BYTES = 48 * 1024 * 1024
_TILE_BUDGET_BYTES = 28 * 1024 * 1024


def _choose_tile_n(n, c, itemsize, tile_budget_bytes=_TILE_BUDGET_BYTES):
    """Rows per tile from an honest per-step VMEM footprint, multiple of 8."""
    # Per-row VMEM bytes of one grid step:
    #   pred   : 2 pipeline buffers x C x itemsize
    #   labels : 2 pipeline buffers x 128-lane-padded int32 row (512 B each)
    #   temps  : ~3 tile-sized f32 intermediates (f32 cast/shifted, e, select)
    bytes_per_row = 2 * c * itemsize + 2 * 128 * 4 + 3 * c * 4
    rows = tile_budget_bytes // max(1, bytes_per_row)
    rows = int(max(8, min(rows, 8192)))      # byte-driven; 8192 is a sanity cap
    rows -= rows % 8
    n_pad = ((n + 7) // 8) * 8
    return int(min(rows, n_pad))


def label_relaxation_loss(pred, target, *, alpha=0.1, num_classes=-1,
                          logits_provided=True, one_hot_encode_trgts=True,
                          gz_threshold=0.1):
    """pred: [N, C] logits, target: [N] int class indices. Returns scalar loss."""
    assert logits_provided and one_hot_encode_trgts, \
        "kernel implements the default config (logits + integer targets)"
    assert 0.0 < alpha < 1.0
    # closed form relies on one-hot targets compared against gz in [0, 1)
    assert 0.0 <= gz_threshold < 1.0

    n, c = pred.shape
    if num_classes > 0:
        assert num_classes == c
    labels2d = target.reshape(n, 1).astype(jnp.int32)

    itemsize = jnp.dtype(pred.dtype).itemsize
    tile_n = _choose_tile_n(n, c, itemsize)
    num_tiles = pl.cdiv(n, tile_n)
    grid = (num_tiles,)

    kernel = functools.partial(
        _label_relaxation_kernel,
        alpha=float(alpha),
        log_alpha=float(math.log(alpha)),
        log_one_minus_alpha=float(math.log1p(-alpha)),
        n_rows=n, tile_n=tile_n)

    cost = pl.CostEstimate(
        flops=int(8 * n * c),
        transcendentals=int(n * c + 3 * n),
        bytes_accessed=int(n * c * itemsize + n * 4 + num_tiles * 4),
    )

    partial_sums = pl.pallas_call(
        kernel,
        out_shape=jax.ShapeDtypeStruct((num_tiles, 1), jnp.float32),
        grid=grid,
        in_specs=[
            pl.BlockSpec((tile_n, 1), lambda i: (i, 0)),   # labels tile (VMEM)
            pl.BlockSpec((tile_n, c), lambda i: (i, 0)),   # pred tile (VMEM)
        ],
        out_specs=pl.BlockSpec((1, 1), lambda i: (i, 0),   # per-tile partial sum
                               memory_space=pltpu.MemorySpace.SMEM),
        compiler_params=pltpu.CompilerParams(
            dimension_semantics=("parallel",),             # shard across TCs
            vmem_limit_bytes=_VMEM_LIMIT_BYTES),
        cost_estimate=cost,
    )(labels2d, pred)

    return jnp.sum(partial_sums) / jnp.float32(n)


def _reference_loss(pred, target, alpha=0.1, gz=0.1):
    """Pure-JAX reference mirroring the PyTorch module exactly."""
    p = jax.nn.softmax(pred.astype(jnp.float32), axis=-1)
    t = jax.nn.one_hot(target, pred.shape[-1], dtype=jnp.float32)
    sum_y_hat_prime = jnp.sum((1.0 - t) * p, axis=-1)
    pred_hat = alpha * p / sum_y_hat_prime[:, None]
    target_credal = jnp.where(t > gz, 1.0 - alpha, pred_hat)
    kl = jnp.where(target_credal > 0.0,
                   target_credal * (jnp.log(target_credal) - jnp.log(p)), 0.0)
    divergence = jnp.sum(kl, axis=-1)
    true_p = jnp.sum(p * t, axis=-1)
    result = jnp.where(true_p > 1.0 - alpha, 0.0, divergence)
    return jnp.mean(result)


if __name__ == "__main__":
    key = jax.random.PRNGKey(0)
    k1, k2 = jax.random.split(key)

    batch, num_classes = 8, 32
    pred = jax.random.normal(k1, (batch, num_classes), dtype=jnp.float32)
    target = jax.random.randint(k2, (batch,), 0, num_classes, dtype=jnp.int32)

    loss = label_relaxation_loss(pred, target, alpha=0.1, num_classes=num_classes)
    loss = jax.block_until_ready(loss)

    ref = _reference_loss(pred, target, alpha=0.1)
    assert jnp.allclose(loss, ref, atol=1e-5, rtol=1e-5), (loss, ref)

    print("KERNEL_OK")
</pallas_src>

<mosaic_0001>
module attributes {stable_mosaic.version = 11 : i64} {
  func.func @_label_relaxation_kernel(%arg0: i32, %arg1: memref<8x1xi32, #tpu.memory_space<vmem>>, %arg2: memref<8x32xf32, #tpu.memory_space<vmem>>, %arg3: memref<1x1xf32, #tpu.memory_space<smem>>) attributes {dimension_semantics = [#tpu.dimension_semantics<parallel>], iteration_bounds = array<i64: 1>, scalar_prefetch = 0 : i64, scratch_operands = 0 : i64, tpu.core_type = #tpu.core_type<tc>, window_params = [{transform_indices = @transform_0, window_bounds = array<i64: 8, 1>}, {transform_indices = @transform_1, window_bounds = array<i64: 8, 32>}, {transform_indices = @transform_2, window_bounds = array<i64: 1, 1>}]} {
    %c0 = arith.constant 0 : index
    %c0_0 = arith.constant 0 : index
    %0 = vector.load %arg2[%c0, %c0_0] : memref<8x32xf32, #tpu.memory_space<vmem>>, vector<8x32xf32>
    %c0_1 = arith.constant 0 : index
    %c0_2 = arith.constant 0 : index
    %1 = vector.load %arg1[%c0_1, %c0_2] : memref<8x1xi32, #tpu.memory_space<vmem>>, vector<8x1xi32>
    %2 = tpu.iota {dimensions = array<i32: 0>} : vector<8x1xi32>
    %c8_i32 = arith.constant 8 : i32
    %3 = arith.muli %arg0, %c8_i32 : i32
    %4 = vector.broadcast %3 : i32 to vector<8x1xi32>
    %5 = arith.addi %2, %4 : vector<8x1xi32>
    %c8_i32_3 = arith.constant 8 : i32
    %6 = vector.broadcast %c8_i32_3 : i32 to vector<8x1xi32>
    %7 = arith.cmpi slt, %5, %6 : vector<8x1xi32>
    %cst = arith.constant 0.000000e+00 : f32
    %8 = vector.shape_cast %7 : vector<8x1xi1> to vector<8x1xi1>
    %9 = vector.broadcast %8 : vector<8x1xi1> to vector<8x32xi1>
    %10 = vector.broadcast %cst : f32 to vector<8x32xf32>
    %11 = arith.select %9, %0, %10 : vector<8x32xi1>, vector<8x32xf32>
    %12 = tpu.iota {dimensions = array<i32: 1>} : vector<8x32xi32>
    %13 = vector.broadcast %1 : vector<8x1xi32> to vector<8x32xi32>
    %14 = arith.cmpi eq, %12, %13 : vector<8x32xi32>
    %cst_4 = arith.constant dense<0xFF800000> : vector<8xf32>
    %15 = vector.multi_reduction <maximumf>, %11, %cst_4 [1] : vector<8x32xf32> to vector<8xf32>
    %16 = vector.shape_cast %15 : vector<8xf32> to vector<8x1xf32>
    %17 = vector.broadcast %16 : vector<8x1xf32> to vector<8x32xf32>
    %18 = arith.subf %11, %17 : vector<8x32xf32>
    %19 = math.exp %18 : vector<8x32xf32>
    %cst_5 = arith.constant dense<0.000000e+00> : vector<8xf32>
    %20 = vector.multi_reduction <add>, %19, %cst_5 [1] : vector<8x32xf32> to vector<8xf32>
    %21 = vector.shape_cast %20 : vector<8xf32> to vector<8x1xf32>
    %cst_6 = arith.constant 0.000000e+00 : f32
    %22 = vector.broadcast %cst_6 : f32 to vector<8x32xf32>
    %23 = arith.select %14, %18, %22 : vector<8x32xi1>, vector<8x32xf32>
    %cst_7 = arith.constant dense<0.000000e+00> : vector<8xf32>
    %24 = vector.multi_reduction <add>, %23, %cst_7 [1] : vector<8x32xf32> to vector<8xf32>
    %25 = vector.shape_cast %24 : vector<8xf32> to vector<8x1xf32>
    %26 = math.log %21 : vector<8x1xf32>
    %27 = arith.subf %25, %26 : vector<8x1xf32>
    %28 = math.exp %25 : vector<8x1xf32>
    %29 = arith.subf %21, %28 : vector<8x1xf32>
    %30 = math.log %29 : vector<8x1xf32>
    %31 = arith.subf %30, %26 : vector<8x1xf32>
    %cst_8 = arith.constant -2.30258512 : f32
    %32 = vector.broadcast %cst_8 : f32 to vector<8x1xf32>
    %33 = arith.subf %32, %31 : vector<8x1xf32>
    %cst_9 = arith.constant 1.000000e-01 : f32
    %34 = vector.broadcast %cst_9 : f32 to vector<8x1xf32>
    %35 = arith.mulf %34, %33 : vector<8x1xf32>
    %cst_10 = arith.constant -0.105360515 : f32
    %36 = vector.broadcast %cst_10 : f32 to vector<8x1xf32>
    %37 = arith.subf %36, %27 : vector<8x1xf32>
    %cst_11 = arith.constant 0.899999976 : f32
    %38 = vector.broadcast %cst_11 : f32 to vector<8x1xf32>
    %39 = arith.mulf %38, %37 : vector<8x1xf32>
    %40 = arith.addf %35, %39 : vector<8x1xf32>
    %cst_12 = arith.constant 1.000000e-01 : f32
    %41 = vector.broadcast %cst_12 : f32 to vector<8x1xf32>
    %42 = arith.mulf %41, %21 : vector<8x1xf32>
    %43 = arith.cmpf olt, %29, %42 : vector<8x1xf32>
    %cst_13 = arith.constant 0.000000e+00 : f32
    %44 = vector.broadcast %cst_13 : f32 to vector<8x1xf32>
    %45 = arith.select %43, %44, %40 : vector<8x1xi1>, vector<8x1xf32>
    %cst_14 = arith.constant 0.000000e+00 : f32
    %46 = vector.broadcast %cst_14 : f32 to vector<8x1xf32>
    %47 = arith.select %7, %45, %46 : vector<8x1xi1>, vector<8x1xf32>
    %48 = vector.shape_cast %47 : vector<8x1xf32> to vector<1x8x1xf32>
    %cst_15 = arith.constant dense<0.000000e+00> : vector<1xf32>
    %49 = vector.multi_reduction <add>, %48, %cst_15 [1, 2] : vector<1x8x1xf32> to vector<1xf32>
    %50 = vector.shape_cast %49 : vector<1xf32> to vector<1x1x1xf32>
    %51 = vector.extract %50[0, 0, 0] : f32 from vector<1x1x1xf32>
    %c0_16 = arith.constant 0 : index
    %c0_17 = arith.constant 0 : index
    %52 = memref.load %arg3[%c0_16, %c0_17] : memref<1x1xf32, #tpu.memory_space<smem>>
    memref.store %51, %arg3[%c0_16, %c0_17] : memref<1x1xf32, #tpu.memory_space<smem>>
    return
  }
  func.func @transform_0(%arg0: i32) -> (i32, i32) {
    %c0_i32 = arith.constant 0 : i32
    %c0_i32_0 = arith.constant 0 : i32
    return %arg0, %c0_i32 : i32, i32
  }
  func.func @transform_1(%arg0: i32) -> (i32, i32) {
    %c0_i32 = arith.constant 0 : i32
    %c0_i32_0 = arith.constant 0 : i32
    return %arg0, %c0_i32 : i32, i32
  }
  func.func @transform_2(%arg0: i32) -> (i32, i32) {
    %c0_i32 = arith.constant 0 : i32
    %c0_i32_0 = arith.constant 0 : i32
    return %arg0, %c0_i32 : i32, i32
  }
}

</mosaic_0001>

<bundles_post_ra>
// kernel: tpu_custom_call.1
= control target key start
LH: loop header
LB: loop body
LE: loop exit
PB: predicated region body
PF: predicated region fallthrough
CT: control target
= control target key end

     0   :  { %vm29_vm0 = vcmask 261120   ;;  %s139_s0 = inlined_call_operand.vmem [shape: s32[8,1], index: 0, kind: input, shape index: {}]   ;;  %s140_s1 = inlined_call_operand.vmem [shape: f32[8,32], index: 1, kind: input, shape index: {}]   ;;  %s141_s2 = inlined_call_operand.hbm [shape: f32[1,1], index: 2, kind: output, shape index: {}]  }
   0x1   :  { %v12_v0 = vld [vmem:[%s140_s1] sm:$0xff] }
   0x2   :  { %7 = vsyncpa [#allocation3], 0  ;;  %v30_v1 = vsel %vm29_vm0, %v12_v0, -inf  ;;  %v110_v2 = vmov 0   ;;  %v13_v3 = vld [vmem:[%s139_s0] sm:$0xff]  ;;  %v23_v6 = vlaneseq  ;;  %vm61_vm2 = vcmask 7168  }
   0x3   :  { %91 = vset.pattern.permute.xlu0 %v110_v2  ;;  %s111_s1 = smov [#allocation2]  }
   0x4   :  { %31 = vmax.xlane.f32.xlu0 %v30_v1  ;;  %v24_v8 = vand.u32 127, %v23_v6 }
  0x1a   :  { %26 = vperm.xlu0 %91, %v13_v3  }
  0x8d   :  { %v32_v4 = vpop.xlane.xlu0 %31 }
  0x8e   :  { %v33_v5 = vsub.f32 %v12_v0, %v32_v4 }
  0x90   :  { %v34_v7 = vmul.f32 1.442695, %v33_v5 }
  0x92   :  { %92 = vpow2.f32 %v34_v7 }
  0x95   :  { %v27_v9 = vpop.permute.xlu0 %26 }
  0x96   :  { %vm28_vm1 = vcmp.eq.s32.totalorder %v24_v8, %v27_v9 }
  0x97   :  { %v39_v10 = vsel %vm28_vm1, %v33_v5, 0.0 }
  0x98   :  { %v40_v11 = vsel %vm29_vm0, %v39_v10, 0.0 }
  0x99   :  { %41 = vadd.xlane.f32.xlu1 %v40_v11 }
  0x9f   :  { %v93_v12 = vpop.eup %92 }
  0xa0   :  { %v36_v13 = vsel %vm29_vm0, %v93_v12, 0.0 }
  0xa1   :  { %37 = vadd.xlane.f32.xlu1 %v36_v13 }
 0x122   :  { %v42_v14 = vpop.xlane.xlu1 %41 }
 0x123   :  { %v46_v15 = vmul.f32 1.442695, %v42_v14 }
 0x125   :  { %94 = vpow2.f32 %v46_v15 }
 0x12a   :  { %v38_v16 = vpop.xlane.xlu1 %37 }
 0x12b   :  { %96 = vlog2.f32 %v38_v16  ;;  %v57_v29 = vmul.f32 0.1, %v38_v16 }
 0x132   :  { %v95_v17 = vpop.eup %94 }
 0x133   :  { %v48_v18 = vsub.f32 %v38_v16, %v95_v17 }
 0x135   :  { %98 = vlog2.f32 %v48_v18  ;;  %vm58_vm3 = vcmp.lt.f32.partialorder %v48_v18, %v57_v29 }
 0x138   :  { %v97_v19 = vpop.eup %96 }
 0x139   :  { %v44_v20 = vmul.f32 0.6931472, %v97_v19 }
 0x13b   :  { %v45_v21 = vsub.f32 %v42_v14, %v44_v20 }
 0x13d   :  { %v54_v25 = vsub.f32 -0.105360515, %v45_v21 }
 0x13f   :  { %v55_v28 = vmul.f32 0.9, %v54_v25 }
 0x142   :  { %v99_v22 = vpop.eup %98 }
 0x143   :  { %v50_v23 = vmul.f32 0.6931472, %v99_v22 }
 0x145   :  { %v51_v24 = vsub.f32 %v50_v23, %v44_v20 }
 0x147   :  { %v52_v26 = vsub.f32 -2.3025851, %v51_v24 }
 0x149   :  { %v53_v27 = vmul.f32 0.1, %v52_v26 }
 0x14b   :  { %v56_v30 = vadd.f32 %v55_v28, %v53_v27 }
 0x14d   :  { %v59_v31 = vsel %vm58_vm3, 0.0, %v56_v30 }
 0x14e   :  { %v62_v32 = vsel %vm61_vm2, %v59_v31, 0.0 }
 0x14f   :  { %63 = vadd.xlane.f32.xlu1 %v62_v32 }
 0x1d8   :  { %v64_v33 = vpop.xlane.xlu1 %63 }
 0x1d9   :  { %v65_v34 = vrot.slane %v64_v33, 4 }
 0x1db   :  { %v66_v35 = vadd.f32 %v65_v34, %v64_v33 }
 0x1dd   :  { %v67_v36 = vrot.slane %v66_v35, 2 }
 0x1df   :  { %v68_v37 = vadd.f32 %v67_v36, %v66_v35 }
 0x1e1   :  { %v69_v38 = vrot.slane %v68_v37, 1 }
 0x1e3   :  { %v70_v39 = vadd.f32 %v69_v38, %v68_v37 }
 0x1e5   :  { %87 = vpush %v70_v39 }
 0x216   :  { %s88_s0 = spop %87 }
 0x217   :  { %73 = sst [smem:[#allocation2]] %s88_s0 }
 0x218   :  { %81 = dma.smem_to_hbm %s111_s1, 16, %s141_s2, [#allocation3]  }
 0x219   :  { %108 = dma.done.wait [#allocation3], 16  }
 0x21a   :  { %109 = vsyncadd [#allocation3], 4294967280 }
 0x21b   :  { %85 = sfence }
 0x21c   :  { %86 = vsyncpa [#allocation3], 1 }

</bundles_post_ra>
